<compile_context>
chip_gen: v7x
topology: tpu7x:2x2x1
jax: 0.10.0
libtpu: 0.0.40
codegen_flags: <defaults>
</compile_context>

<pallas_src>
import jax
import jax.numpy as jnp
from jax.experimental import pallas as pl
from jax.experimental.pallas import tpu as pltpu


def _norm_kernel(s_ref, x_ref, o_ref):
    # s_ref: (1,) scalar scale in SMEM
    # x_ref / o_ref: (tb, D) tile in VMEM
    x = x_ref[...]
    xf = x.astype(jnp.float32)
    # Cross-lane reduce (XLU) in f32; rsqrt on EUP. Both off the load/store critical path.
    sq_sum = jnp.sum(xf * xf, axis=-1, keepdims=True)          # (tb, 1)
    # Fold the learned scale into the per-row factor; single broadcast multiply.
    # No epsilon guard: matches the PyTorch reference (x / ||x||).
    f = s_ref[0] * jax.lax.rsqrt(sq_sum)                        # (tb, 1) f32
    # Final multiply in the native dtype (halves VALU width for bf16/int8 and avoids
    # keeping the full f32 tile live across the store).
    o_ref[...] = (x * f.astype(x.dtype)).astype(o_ref.dtype)


def _vmem_capacity_bytes():
    """Physical VMEM per TensorCore (64 MiB on v7x, 128 MiB on v5e/v6e)."""
    try:
        info = pltpu.get_tpu_info()
        cap = getattr(info, "vmem_capacity_bytes", None)
        if cap:
            return int(cap)
    except Exception:
        pass
    return 64 * 1024 * 1024  # conservative fallback (v7x per-TC)


def _pick_tb(B, D, itemsize, vmem_cap):
    """Choose a dtype-aware, generation-aware, VMEM-budgeted row tile."""
    # Sublane packing: f32 -> 8 rows / vreg, bf16 -> 16, int8/fp8 -> 32.
    sub = {4: 8, 2: 16, 1: 32}.get(int(itemsize), 8)
    if B <= sub:
        return B  # single full-dim block (always legal), one grid step

    # Per-row VMEM cost of the pipelined working set:
    #   4 * D * itemsize : double-buffered input + output tiles (native dtype)
    #   4 * D            : f32 upcast intermediate used by the square-sum
    bytes_per_row = 4 * D * itemsize + 4 * D

    # Spend up to ~half of physical VMEM on the working set; leaves headroom for
    # vregs / compiler scratch on every generation (32 MiB on v7x, 64 MiB on v5e/v6e).
    budget = vmem_cap // 2
    tb = max(sub, budget // bytes_per_row)
    tb = max(sub, (tb // sub) * sub)

    # Give 2-TC parts (v7x megacore sharding of the 'parallel' axis) >= ~8 grid blocks.
    eight_way = pl.cdiv(pl.cdiv(B, 8), sub) * sub
    tb = min(tb, max(sub, eight_way))

    # Never wider than the (sublane-rounded) batch.
    tb = min(tb, pl.cdiv(B, sub) * sub)
    return tb


def normalization_layer(x, norm_s, *, tb=None):
    """x: (B, D) array; norm_s: scalar (learned scale). Returns norm_s * x / ||x||_2 per row."""
    B, D = x.shape
    itemsize = jnp.dtype(x.dtype).itemsize
    vmem_cap = _vmem_capacity_bytes()
    if tb is None:
        tb = _pick_tb(B, D, itemsize, vmem_cap)

    # TODO(synk): for very large D (one sublane-packed tile alone exceeds ~half of VMEM),
    # add a second 'arbitrary' grid axis over D with a two-sweep (sq-sum, then scale) kernel.

    s = jnp.asarray(norm_s, dtype=jnp.float32).reshape((1,))
    # Ragged batch handled by Pallas partial final block (masked store) — no host pad/slice.
    grid = (pl.cdiv(B, tb),)

    # Scoped-VMEM limit: double-buffered in+out tiles + f32 upcast intermediate + headroom,
    # capped at 3/4 of physical VMEM (v7x 64 MiB vs v5e/v6e 128 MiB aware).
    working_set = tb * (4 * D * itemsize + 4 * D)
    vmem_limit = int(min(vmem_cap * 3 // 4,
                         max(32 * 1024 * 1024, working_set + 16 * 1024 * 1024)))

    # Note: D is always the full feature dim per block, so any D is legal; lane-dense
    # (D % 128 == 0) shapes get unmasked stores, which is the fast path.
    return pl.pallas_call(
        _norm_kernel,
        out_shape=jax.ShapeDtypeStruct((B, D), x.dtype),
        grid_spec=pltpu.PrefetchScalarGridSpec(
            num_scalar_prefetch=0,
            grid=grid,
            in_specs=[
                pl.BlockSpec(memory_space=pltpu.SMEM),            # scalar scale
                pl.BlockSpec((tb, D), lambda i: (i, 0)),          # x tile
            ],
            out_specs=pl.BlockSpec((tb, D), lambda i: (i, 0)),
        ),
        compiler_params=pltpu.CompilerParams(
            dimension_semantics=("parallel",),
            vmem_limit_bytes=vmem_limit,
        ),
    )(s, x)


if __name__ == "__main__":
    key = jax.random.PRNGKey(0)

    # Deterministic parameter init: learn_scale=True -> scalar Parameter initialized to normalize_scale.
    normalize_scale = 1.0
    norm_s = jnp.float32(normalize_scale)

    # Case 1: small f32 (batch=8, hidden=128, feature dim = torch dim 1)
    k1, k2 = jax.random.split(key)
    B, D = 8, 128
    x = jax.random.normal(k1, (B, D), dtype=jnp.float32)
    out = jax.block_until_ready(normalization_layer(x, norm_s))
    ref = norm_s * x / jnp.linalg.norm(x, axis=1, keepdims=True)
    assert out.shape == x.shape and out.dtype == x.dtype
    assert jnp.allclose(out, ref, atol=1e-5, rtol=1e-5)

    # Case 2: ragged batch + bf16 (exercises the masked partial final block and
    # dtype-aware tiling — no host-side padding anymore)
    B2, D2 = 37, 256
    x2 = jax.random.normal(k2, (B2, D2), dtype=jnp.bfloat16)
    out2 = jax.block_until_ready(normalization_layer(x2, norm_s))
    x2_f = x2.astype(jnp.float32)
    ref2 = norm_s * x2_f / jnp.linalg.norm(x2_f, axis=1, keepdims=True)
    assert out2.shape == x2.shape and out2.dtype == x2.dtype
    assert jnp.allclose(out2.astype(jnp.float32), ref2, atol=2e-2, rtol=2e-2)

    print("KERNEL_OK")
</pallas_src>

<mosaic_0001>
module attributes {stable_mosaic.version = 11 : i64} {
  func.func @_norm_kernel(%arg0: i32, %arg1: memref<1xf32, #tpu.memory_space<smem>>, %arg2: memref<8x128xf32, #tpu.memory_space<vmem>>, %arg3: memref<8x128xf32, #tpu.memory_space<vmem>>) attributes {dimension_semantics = [#tpu.dimension_semantics<parallel>], iteration_bounds = array<i64: 1>, scalar_prefetch = 0 : i64, scratch_operands = 0 : i64, tpu.core_type = #tpu.core_type<tc>, window_params = [{transform_indices = @transform_0, window_bounds = array<i64: 1>}, {transform_indices = @transform_1, window_bounds = array<i64: 8, 128>}, {transform_indices = @transform_2, window_bounds = array<i64: 8, 128>}]} {
    %c0 = arith.constant 0 : index
    %c0_0 = arith.constant 0 : index
    %0 = vector.load %arg2[%c0, %c0_0] : memref<8x128xf32, #tpu.memory_space<vmem>>, vector<8x128xf32>
    %1 = arith.mulf %0, %0 : vector<8x128xf32>
    %cst = arith.constant dense<0.000000e+00> : vector<8xf32>
    %2 = vector.multi_reduction <add>, %1, %cst [1] : vector<8x128xf32> to vector<8xf32>
    %3 = vector.shape_cast %2 : vector<8xf32> to vector<8x1xf32>
    %c0_1 = arith.constant 0 : index
    %4 = memref.load %arg1[%c0_1] : memref<1xf32, #tpu.memory_space<smem>>
    %5 = math.rsqrt %3 : vector<8x1xf32>
    %6 = vector.broadcast %4 : f32 to vector<8x1xf32>
    %7 = arith.mulf %6, %5 : vector<8x1xf32>
    %8 = vector.broadcast %7 : vector<8x1xf32> to vector<8x128xf32>
    %9 = arith.mulf %0, %8 : vector<8x128xf32>
    %c0_2 = arith.constant 0 : index
    %c0_3 = arith.constant 0 : index
    %10 = vector.load %arg3[%c0_2, %c0_3] : memref<8x128xf32, #tpu.memory_space<vmem>>, vector<8x128xf32>
    tpu.vector_store %arg3[%c0_2, %c0_3], %9 {strides = array<i32>} : memref<8x128xf32, #tpu.memory_space<vmem>>, vector<8x128xf32>,
    return
  }
  func.func @transform_0(%arg0: i32) -> i32 {
    %c0_i32 = arith.constant 0 : i32
    %c0_i32_0 = arith.constant 0 : i32
    return %c0_i32 : i32
  }
  func.func @transform_1(%arg0: i32) -> (i32, i32) {
    %c0_i32 = arith.constant 0 : i32
    %c0_i32_0 = arith.constant 0 : i32
    return %arg0, %c0_i32 : i32, i32
  }
  func.func @transform_2(%arg0: i32) -> (i32, i32) {
    %c0_i32 = arith.constant 0 : i32
    %c0_i32_0 = arith.constant 0 : i32
    return %arg0, %c0_i32 : i32, i32
  }
}

</mosaic_0001>

<bundles_post_ra>
// kernel: tpu_custom_call.1
= control target key start
LH: loop header
LB: loop body
LE: loop exit
PB: predicated region body
PF: predicated region fallthrough
CT: control target
= control target key end

     0   :  { %8 = vsyncpa [#allocation4], 0  ;;  %s146_s0 = inlined_call_operand.<no memory space> [shape: f32[1], index: 0, kind: input, shape index: {}]   ;;  %s147_s1 = inlined_call_operand.hbm [shape: f32[8,128], index: 1, kind: input, shape index: {}]   ;;  %s148_s2 = inlined_call_operand.hbm [shape: f32[8,128], index: 2, kind: output, shape index: {}]  }
   0x1   :  { %9 = vsyncpa [#allocation5], 0  ;;  %s102_s9 = smov [#allocation3]   ;;  %s54_s13 = scalar_lea.hbm %s147_s1, 128 }
   0x2   :  { %s18_s10 = sshll.u32 %s102_s9, 4  ;;  %p55_p0 = scmp.ne.s32.totalorder %s147_s1, %s54_s13  ;;  %s19_s10 = int_to_ptr.vmem [resolvable:$true] %s18_s10 }
   0x3   :  { %p58_p1 = scmp.lt.u32.totalorder %s54_s13, %s147_s1 }
   0x5   :  { %p60_p2 = pnand %p58_p1, %p55_p0 }
   0x7   :  { %63 = shalt.err (!%p60_p2)
}
   0x8   :  { %s64_s18 = scalar_lea.vmem %s19_s10, 128  ;;  %p69_p4 = scmp.lt.s32.totalorder %s19_s10, %s19_s10 }
   0x9   :  { %p65_p3 = scmp.ne.s32.totalorder %s19_s10, %s64_s18  ;;  %p70_p5 = scmp.lt.s32.totalorder %s64_s18, %s64_s18 }
   0xb   :  { %p71_p6 = por %p70_p5, %p69_p4 }
   0xd   :  { %p72_p7 = pnand %p71_p6, %p65_p3 }
   0xf   :  { %75 = shalt.err (!%p72_p7)
}
  0x10   :  { %21 = dma.hbm_to_vmem [thread:$0]  %s147_s1, 128, %s19_s10, [#allocation4]  }
  0x11   :  { %98 = dma.done.wait [#allocation4], 128  }
  0x12   :  { %99 = vsyncadd [#allocation4], 4294967168  ;;  %v25_v0 = vld [vmem:[#allocation3] sm:$0xff]  ;;  %v31_v3 = vstv %s146_s0  ;;  %s103_s23 = smov [#allocation6]  }
  0x13   :  { %v26_v1 = vmul.f32 %v25_v0, %v25_v0  ;;  %s41_s24 = sshll.u32 %s103_s23, 4  ;;  %s42_s24 = int_to_ptr.vmem [resolvable:$true] %s41_s24 }
  0x14   :  { %s76_s25 = scalar_lea.vmem %s42_s24, 128  ;;  %p81_p9 = scmp.lt.s32.totalorder %s42_s24, %s42_s24 }
  0x15   :  { %27 = vadd.xlane.f32.xlu0 %v26_v1  ;;  %p77_p8 = scmp.ne.s32.totalorder %s42_s24, %s76_s25  ;;  %p82_p10 = scmp.lt.s32.totalorder %s76_s25, %s76_s25 }
  0x17   :  { %p83_p11 = por %p82_p10, %p81_p9 }
  0x19   :  { %p84_p12 = pnand %p83_p11, %p77_p8 }
  0xa2   :  { %v28_v2 = vpop.xlane.xlu0 %27 }
  0xa3   :  { %52 = vrsqrt.f32 %v28_v2 }
  0xad   :  { %v53_v4 = vpop.eup %52 }
  0xae   :  { %v32_v5 = vmul.f32 %v53_v4, %v31_v3 }
  0xb0   :  { %v33_v6 = vmul.f32 %v32_v5, %v25_v0 }
  0xb2   :  { %34 = vst [vmem:[#allocation6] sm:$0xff] %v33_v6 }
  0xb3   :  { %87 = shalt.err (!%p84_p12)
}
  0xb4   :  { %s88_s27 = scalar_lea.hbm %s148_s2, 128 }
  0xb5   :  { %p89_p13 = scmp.ne.s32.totalorder %s148_s2, %s88_s27  ;;  %p92_p0 = scmp.lt.u32.totalorder %s88_s27, %s148_s2 }
  0xb7   :  { %p94_p1 = pnand %p92_p0, %p89_p13 }
  0xb9   :  { %97 = shalt.err (!%p94_p1)
}
  0xba   :  { %44 = dma.vmem_to_hbm [thread:$0]  %s42_s24, 128, %s148_s2, [#allocation5]  }
  0xbb   :  { %100 = dma.done.wait [#allocation5], 128  }
  0xbc   :  { %101 = vsyncadd [#allocation5], 4294967168 }
  0xbd   :  { %48 = vsyncpa [#allocation4], 1 }
  0xbe   :  { %49 = vsyncpa [#allocation5], 1 }

</bundles_post_ra>
